<compile_context>
chip_gen: v7x
topology: tpu7x:2x2x1
jax: 0.10.0
libtpu: 0.0.40
codegen_flags: <defaults>
</compile_context>

<pallas_src>
import functools

import jax
import jax.numpy as jnp
from jax.experimental import pallas as pl
from jax.experimental.pallas import tpu as pltpu


def _conv_stats_kernel(p_ref, w_ref, g_ref, b_ref, o_ref, scale_ref, shift_ref,
                       *, m_total, eps):
    """Conv-as-matmul tile (bf16 MXU inputs, f32 acc) + fused BN scale/shift."""
    mi = pl.program_id(1)                      # row-tile (reduction) axis, innermost

    y = jnp.dot(p_ref[...], w_ref[...], preferred_element_type=jnp.float32)
    o_ref[...] = y

    @pl.when(mi == 0)
    def _():
        scale_ref[...] = jnp.zeros_like(scale_ref)
        shift_ref[...] = jnp.zeros_like(shift_ref)

    # While iterating, scale_ref holds sum(y), shift_ref holds sum(y*y).
    # NOTE: E[x^2]-E[x]^2 in f32 can cancel for very large M / large activations.
    scale_ref[...] += jnp.sum(y, axis=0, keepdims=True)
    shift_ref[...] += jnp.sum(y * y, axis=0, keepdims=True)

    @pl.when(mi == pl.num_programs(1) - 1)
    def _():
        mean = scale_ref[...] * (1.0 / m_total)
        var = shift_ref[...] * (1.0 / m_total) - mean * mean   # biased (training BN)
        inv_std = jax.lax.rsqrt(var + eps)
        s = g_ref[...] * inv_std
        scale_ref[...] = s                       # gamma / sqrt(var + eps)
        shift_ref[...] = b_ref[...] - mean * s   # beta - mean * scale


def _bn_act_kernel(x_ref, scale_ref, shift_ref, o_ref, *, negative_slope, linear):
    """Pure FMA BatchNorm apply + LeakyReLU (or identity)."""
    y = x_ref[...] * scale_ref[...] + shift_ref[...]
    if not linear:
        y = jnp.where(y > 0, y, negative_slope * y)
    o_ref[...] = y


def _round_up(v, m):
    return ((v + m - 1) // m) * m


@functools.partial(jax.jit,
                   static_argnames=("stride", "linear", "eps", "negative_slope"))
def conv_bn_act(x, weight, gamma, beta, *, stride=1, linear=False,
                eps=1e-5, negative_slope=0.01):
    """Forward pass of the PyTorch `Conv` module. x: (N, C_in, H, W) NCHW."""
    N, C_in, H, W = x.shape
    C_out, _, kH, kW = weight.shape
    pad = kH // 2
    H_out = (H + 2 * pad - kH) // stride + 1
    W_out = (W + 2 * pad - kW) // stride + 1
    M = N * H_out * W_out
    K = C_in * kH * kW

    # ---- tiling ----
    C_pad = _round_up(C_out, 128)                  # lane-dense channel axis
    tc = 256 if C_pad % 256 == 0 else 128          # bigger output tile on v6e/v7x
    tm = 256                                       # matmul row tile
    M_pad = _round_up(M, tm)
    n_m = M_pad // tm
    n_c = C_pad // tc
    r2 = 1                                         # larger row tile for mem-bound pass 2
    for cand in (8, 4, 2):
        if n_m % cand == 0 and cand * tm <= 2048:
            r2 = cand
            break
    tm2 = r2 * tm
    n_m2 = M_pad // tm2

    # ---- im2col (plain JAX glue), bf16 to halve HBM traffic ----
    # TODO(synk): fuse im2col into kernel 1 (per-tap shifted-window matmuls from an
    # NHWC-padded input) to avoid materializing the kH*kW-times-larger patch matrix.
    xp = jnp.pad(x, ((0, 0), (0, 0), (pad, pad), (pad, pad)))
    cols = []
    for dy in range(kH):
        for dx in range(kW):
            cols.append(xp[:, :, dy:dy + stride * H_out:stride,
                               dx:dx + stride * W_out:stride])
    patches = jnp.stack(cols, axis=2)              # (N, C_in, kH*kW, H_out, W_out)
    patches = patches.transpose(0, 3, 4, 1, 2).reshape(M, K).astype(jnp.bfloat16)
    if M_pad != M:
        # Zero rows contribute nothing to the BN sums (we divide by the true M).
        patches = jnp.pad(patches, ((0, M_pad - M), (0, 0)))

    w2d = weight.reshape(C_out, K).T.astype(jnp.bfloat16)       # (K, C_out)
    w2d = jnp.pad(w2d, ((0, 0), (0, C_pad - C_out)))            # lane-dense (K, C_pad)
    gamma2d = jnp.pad(gamma.astype(jnp.float32).reshape(1, C_out),
                      ((0, 0), (0, C_pad - C_out)))
    beta2d = jnp.pad(beta.astype(jnp.float32).reshape(1, C_out),
                     ((0, 0), (0, C_pad - C_out)))

    # ---- Pallas kernel 1: conv matmul + BN stats folded into scale/shift ----
    conv_out, scale, shift = pl.pallas_call(
        functools.partial(_conv_stats_kernel, m_total=float(M), eps=float(eps)),
        out_shape=(jax.ShapeDtypeStruct((M_pad, C_pad), jnp.float32),
                   jax.ShapeDtypeStruct((1, C_pad), jnp.float32),
                   jax.ShapeDtypeStruct((1, C_pad), jnp.float32)),
        grid_spec=pltpu.PrefetchScalarGridSpec(
            num_scalar_prefetch=0,
            grid=(n_c, n_m),                       # c: parallel (megacore), m: reduction
            in_specs=[pl.BlockSpec((tm, K), lambda c, m: (m, 0)),
                      pl.BlockSpec((K, tc), lambda c, m: (0, c)),
                      pl.BlockSpec((1, tc), lambda c, m: (0, c)),
                      pl.BlockSpec((1, tc), lambda c, m: (0, c))],
            out_specs=[pl.BlockSpec((tm, tc), lambda c, m: (m, c)),
                       pl.BlockSpec((1, tc), lambda c, m: (0, c)),
                       pl.BlockSpec((1, tc), lambda c, m: (0, c))]),
        compiler_params=pltpu.CompilerParams(
            dimension_semantics=("parallel", "arbitrary"),
            vmem_limit_bytes=48 * 1024 * 1024),
    )(patches, w2d, gamma2d, beta2d)

    # ---- Pallas kernel 2: BN apply (single FMA) + LeakyReLU, big tiles, in-place ----
    y = pl.pallas_call(
        functools.partial(_bn_act_kernel, negative_slope=negative_slope,
                          linear=linear),
        out_shape=jax.ShapeDtypeStruct((M_pad, C_pad), jnp.float32),
        grid_spec=pltpu.PrefetchScalarGridSpec(
            num_scalar_prefetch=0,
            grid=(n_m2, n_c),
            in_specs=[pl.BlockSpec((tm2, tc), lambda m, c: (m, c)),
                      pl.BlockSpec((1, tc), lambda m, c: (0, c)),
                      pl.BlockSpec((1, tc), lambda m, c: (0, c))],
            out_specs=pl.BlockSpec((tm2, tc), lambda m, c: (m, c))),
        input_output_aliases={0: 0},               # reuse conv_out buffer in place
        compiler_params=pltpu.CompilerParams(
            dimension_semantics=("parallel", "parallel"),
            vmem_limit_bytes=48 * 1024 * 1024),
    )(conv_out, scale, shift)

    # back to NCHW, drop row / channel padding
    y = y[:M, :C_out].reshape(N, H_out, W_out, C_out).transpose(0, 3, 1, 2)
    return y


def _reference(x, weight, gamma, beta, *, stride, linear,
               eps=1e-5, negative_slope=0.01):
    """Pure-JAX reference reproducing PyTorch semantics (training-mode BN)."""
    k = weight.shape[2]
    y = jax.lax.conv_general_dilated(
        x, weight, window_strides=(stride, stride),
        padding=[(k // 2, k // 2), (k // 2, k // 2)],
        dimension_numbers=("NCHW", "OIHW", "NCHW"))
    mean = y.mean(axis=(0, 2, 3), keepdims=True)
    var = y.var(axis=(0, 2, 3), keepdims=True)          # biased, like training BN
    yn = (y - mean) / jnp.sqrt(var + eps)
    yn = yn * gamma.reshape(1, -1, 1, 1) + beta.reshape(1, -1, 1, 1)
    if not linear:
        yn = jnp.where(yn > 0, yn, negative_slope * yn)
    return yn


if __name__ == "__main__":
    # Module config: Conv(in_channels=4, out_channels=8, kernel_size=3, stride=1, linear=False)
    N, C_in, C_out, H, W, k, stride, linear = 2, 4, 8, 16, 16, 3, 1, False

    key = jax.random.PRNGKey(0)
    kx, kw, kg, kb = jax.random.split(key, 4)
    x = jax.random.normal(kx, (N, C_in, H, W), dtype=jnp.float32)
    weight = 0.1 * jax.random.normal(kw, (C_out, C_in, k, k), dtype=jnp.float32)
    gamma = 1.0 + 0.1 * jax.random.normal(kg, (C_out,), dtype=jnp.float32)
    beta = 0.1 * jax.random.normal(kb, (C_out,), dtype=jnp.float32)

    out = conv_bn_act(x, weight, gamma, beta, stride=stride, linear=linear)
    out = jax.block_until_ready(out)

    ref = _reference(x, weight, gamma, beta, stride=stride, linear=linear)
    assert out.shape == ref.shape, (out.shape, ref.shape)
    err = float(jnp.max(jnp.abs(out - ref)))
    # bf16 MXU inputs vs f32 reference -> looser tolerance than a bit-exact f32 path.
    assert err < 3e-2, err

    # TODO(synk): BatchNorm running_mean / running_var buffer updates (training-time
    # side effect) are not materialized; they do not affect the forward output.
    print("KERNEL_OK")
</pallas_src>

<mosaic_0001>
module attributes {stable_mosaic.version = 11 : i64} {
  func.func @_bn_act_kernel(%arg0: i32, %arg1: i32, %arg2: memref<512x128xf32, #tpu.memory_space<vmem>>, %arg3: memref<1x128xf32, #tpu.memory_space<vmem>>, %arg4: memref<1x128xf32, #tpu.memory_space<vmem>>, %arg5: memref<512x128xf32, #tpu.memory_space<vmem>>) attributes {dimension_semantics = [#tpu.dimension_semantics<parallel>, #tpu.dimension_semantics<parallel>], iteration_bounds = array<i64: 1, 1>, scalar_prefetch = 0 : i64, scratch_operands = 0 : i64, tpu.core_type = #tpu.core_type<tc>, window_params = [{transform_indices = @transform_0, window_bounds = array<i64: 512, 128>}, {transform_indices = @transform_1, window_bounds = array<i64: 1, 128>}, {transform_indices = @transform_2, window_bounds = array<i64: 1, 128>}, {transform_indices = @transform_3, window_bounds = array<i64: 512, 128>}]} {
    %c0 = arith.constant 0 : index
    %c0_0 = arith.constant 0 : index
    %0 = vector.load %arg2[%c0, %c0_0] : memref<512x128xf32, #tpu.memory_space<vmem>>, vector<512x128xf32>
    %c0_1 = arith.constant 0 : index
    %c0_2 = arith.constant 0 : index
    %1 = vector.load %arg3[%c0_1, %c0_2] : memref<1x128xf32, #tpu.memory_space<vmem>>, vector<1x128xf32>
    %2 = vector.broadcast %1 : vector<1x128xf32> to vector<512x128xf32>
    %3 = arith.mulf %0, %2 : vector<512x128xf32>
    %c0_3 = arith.constant 0 : index
    %c0_4 = arith.constant 0 : index
    %4 = vector.load %arg4[%c0_3, %c0_4] : memref<1x128xf32, #tpu.memory_space<vmem>>, vector<1x128xf32>
    %5 = vector.broadcast %4 : vector<1x128xf32> to vector<512x128xf32>
    %6 = arith.addf %3, %5 : vector<512x128xf32>
    %cst = arith.constant 0.000000e+00 : f32
    %7 = vector.broadcast %cst : f32 to vector<512x128xf32>
    %8 = arith.cmpf ogt, %6, %7 : vector<512x128xf32>
    %cst_5 = arith.constant 0.00999999977 : f32
    %9 = vector.broadcast %cst_5 : f32 to vector<512x128xf32>
    %10 = arith.mulf %9, %6 : vector<512x128xf32>
    %11 = arith.select %8, %6, %10 : vector<512x128xi1>, vector<512x128xf32>
    %c0_6 = arith.constant 0 : index
    %c0_7 = arith.constant 0 : index
    %12 = vector.load %arg5[%c0_6, %c0_7] : memref<512x128xf32, #tpu.memory_space<vmem>>, vector<512x128xf32>
    tpu.vector_store %arg5[%c0_6, %c0_7], %11 {strides = array<i32>} : memref<512x128xf32, #tpu.memory_space<vmem>>, vector<512x128xf32>,
    return
  }
  func.func @transform_0(%arg0: i32, %arg1: i32) -> (i32, i32) {
    %c0_i32 = arith.constant 0 : i32
    return %arg0, %arg1 : i32, i32
  }
  func.func @transform_1(%arg0: i32, %arg1: i32) -> (i32, i32) {
    %c0_i32 = arith.constant 0 : i32
    %c0_i32_0 = arith.constant 0 : i32
    return %c0_i32, %arg1 : i32, i32
  }
  func.func @transform_2(%arg0: i32, %arg1: i32) -> (i32, i32) {
    %c0_i32 = arith.constant 0 : i32
    %c0_i32_0 = arith.constant 0 : i32
    return %c0_i32, %arg1 : i32, i32
  }
  func.func @transform_3(%arg0: i32, %arg1: i32) -> (i32, i32) {
    %c0_i32 = arith.constant 0 : i32
    return %arg0, %arg1 : i32, i32
  }
}

module attributes {stable_mosaic.version = 11 : i64} {
  func.func @_conv_stats_kernel(%arg0: i32, %arg1: i32, %arg2: memref<256x36xbf16, #tpu.memory_space<vmem>>, %arg3: memref<36x128xbf16, #tpu.memory_space<vmem>>, %arg4: memref<1x128xf32, #tpu.memory_space<vmem>>, %arg5: memref<1x128xf32, #tpu.memory_space<vmem>>, %arg6: memref<256x128xf32, #tpu.memory_space<vmem>>, %arg7: memref<1x128xf32, #tpu.memory_space<vmem>>, %arg8: memref<1x128xf32, #tpu.memory_space<vmem>>) attributes {dimension_semantics = [#tpu.dimension_semantics<parallel>, #tpu.dimension_semantics<arbitrary>], iteration_bounds = array<i64: 1, 2>, scalar_prefetch = 0 : i64, scratch_operands = 0 : i64, tpu.core_type = #tpu.core_type<tc>, window_params = [{transform_indices = @transform_0, window_bounds = array<i64: 256, 36>}, {transform_indices = @transform_1, window_bounds = array<i64: 36, 128>}, {transform_indices = @transform_2, window_bounds = array<i64: 1, 128>}, {transform_indices = @transform_3, window_bounds = array<i64: 1, 128>}, {transform_indices = @transform_4, window_bounds = array<i64: 256, 128>}, {transform_indices = @transform_5, window_bounds = array<i64: 1, 128>}, {transform_indices = @transform_6, window_bounds = array<i64: 1, 128>}]} {
    %c0 = arith.constant 0 : index
    %c0_0 = arith.constant 0 : index
    %0 = vector.load %arg2[%c0, %c0_0] : memref<256x36xbf16, #tpu.memory_space<vmem>>, vector<256x36xbf16>
    %c0_1 = arith.constant 0 : index
    %c0_2 = arith.constant 0 : index
    %1 = vector.load %arg3[%c0_1, %c0_2] : memref<36x128xbf16, #tpu.memory_space<vmem>>, vector<36x128xbf16>
    %cst = arith.constant dense<0.000000e+00> : vector<256x128xf32>
    %2 = tpu.matmul %0, %1, %cst {dimension_numbers = #tpu.dot_dimension_numbers<[1], [0], [0], [1], [0, 0, 1, 1], [], []>} : vector<256x36xbf16>, vector<36x128xbf16>, vector<256x128xf32> -> vector<256x128xf32>
    %c0_3 = arith.constant 0 : index
    %c0_4 = arith.constant 0 : index
    %3 = vector.load %arg6[%c0_3, %c0_4] : memref<256x128xf32, #tpu.memory_space<vmem>>, vector<256x128xf32>
    tpu.vector_store %arg6[%c0_3, %c0_4], %2 {strides = array<i32>} : memref<256x128xf32, #tpu.memory_space<vmem>>, vector<256x128xf32>,
    %c0_i32 = arith.constant 0 : i32
    %4 = arith.cmpi eq, %arg1, %c0_i32 : i32
    %5 = arith.extui %4 : i1 to i32
    %c0_i32_5 = arith.constant 0 : i32
    %6 = arith.cmpi ne, %5, %c0_i32_5 : i32
    scf.if %6 {
      %cst_17 = arith.constant 0.000000e+00 : f32
      %21 = vector.broadcast %cst_17 : f32 to vector<1x128xf32>
      %c0_18 = arith.constant 0 : index
      %c0_19 = arith.constant 0 : index
      %22 = vector.load %arg7[%c0_18, %c0_19] : memref<1x128xf32, #tpu.memory_space<vmem>>, vector<1x128xf32>
      tpu.vector_store %arg7[%c0_18, %c0_19], %21 {strides = array<i32>} : memref<1x128xf32, #tpu.memory_space<vmem>>, vector<1x128xf32>,
      %cst_20 = arith.constant 0.000000e+00 : f32
      %23 = vector.broadcast %cst_20 : f32 to vector<1x128xf32>
      %c0_21 = arith.constant 0 : index
      %c0_22 = arith.constant 0 : index
      %24 = vector.load %arg8[%c0_21, %c0_22] : memref<1x128xf32, #tpu.memory_space<vmem>>, vector<1x128xf32>
      tpu.vector_store %arg8[%c0_21, %c0_22], %23 {strides = array<i32>} : memref<1x128xf32, #tpu.memory_space<vmem>>, vector<1x128xf32>,
    } else {
    }
    %c0_6 = arith.constant 0 : index
    %c0_7 = arith.constant 0 : index
    %7 = vector.load %arg7[%c0_6, %c0_7] : memref<1x128xf32, #tpu.memory_space<vmem>>, vector<1x128xf32>
    %cst_8 = arith.constant dense<0.000000e+00> : vector<128xf32>
    %8 = vector.multi_reduction <add>, %2, %cst_8 [0] : vector<256x128xf32> to vector<128xf32>
    %9 = vector.shape_cast %8 : vector<128xf32> to vector<1x128xf32>
    %10 = arith.addf %7, %9 : vector<1x128xf32>
    %c0_9 = arith.constant 0 : index
    %c0_10 = arith.constant 0 : index
    %11 = vector.load %arg7[%c0_9, %c0_10] : memref<1x128xf32, #tpu.memory_space<vmem>>, vector<1x128xf32>
    tpu.vector_store %arg7[%c0_9, %c0_10], %10 {strides = array<i32>} : memref<1x128xf32, #tpu.memory_space<vmem>>, vector<1x128xf32>,
    %c0_11 = arith.constant 0 : index
    %c0_12 = arith.constant 0 : index
    %12 = vector.load %arg8[%c0_11, %c0_12] : memref<1x128xf32, #tpu.memory_space<vmem>>, vector<1x128xf32>
    %13 = arith.mulf %2, %2 : vector<256x128xf32>
    %cst_13 = arith.constant dense<0.000000e+00> : vector<128xf32>
    %14 = vector.multi_reduction <add>, %13, %cst_13 [0] : vector<256x128xf32> to vector<128xf32>
    %15 = vector.shape_cast %14 : vector<128xf32> to vector<1x128xf32>
    %16 = arith.addf %12, %15 : vector<1x128xf32>
    %c0_14 = arith.constant 0 : index
    %c0_15 = arith.constant 0 : index
    %17 = vector.load %arg8[%c0_14, %c0_15] : memref<1x128xf32, #tpu.memory_space<vmem>>, vector<1x128xf32>
    tpu.vector_store %arg8[%c0_14, %c0_15], %16 {strides = array<i32>} : memref<1x128xf32, #tpu.memory_space<vmem>>, vector<1x128xf32>,
    %c1_i32 = arith.constant 1 : i32
    %18 = arith.cmpi eq, %arg1, %c1_i32 : i32
    %19 = arith.extui %18 : i1 to i32
    %c0_i32_16 = arith.constant 0 : i32
    %20 = arith.cmpi ne, %19, %c0_i32_16 : i32
    scf.if %20 {
      %c0_17 = arith.constant 0 : index
      %c0_18 = arith.constant 0 : index
      %21 = vector.load %arg7[%c0_17, %c0_18] : memref<1x128xf32, #tpu.memory_space<vmem>>, vector<1x128xf32>
      %cst_19 = arith.constant 0.001953125 : f32
      %22 = vector.broadcast %cst_19 : f32 to vector<1x128xf32>
      %23 = arith.mulf %21, %22 : vector<1x128xf32>
      %c0_20 = arith.constant 0 : index
      %c0_21 = arith.constant 0 : index
      %24 = vector.load %arg8[%c0_20, %c0_21] : memref<1x128xf32, #tpu.memory_space<vmem>>, vector<1x128xf32>
      %cst_22 = arith.constant 0.001953125 : f32
      %25 = vector.broadcast %cst_22 : f32 to vector<1x128xf32>
      %26 = arith.mulf %24, %25 : vector<1x128xf32>
      %27 = arith.mulf %23, %23 : vector<1x128xf32>
      %28 = arith.subf %26, %27 : vector<1x128xf32>
      %cst_23 = arith.constant 9.99999974E-6 : f32
      %29 = vector.broadcast %cst_23 : f32 to vector<1x128xf32>
      %30 = arith.addf %28, %29 : vector<1x128xf32>
      %31 = math.rsqrt %30 : vector<1x128xf32>
      %c0_24 = arith.constant 0 : index
      %c0_25 = arith.constant 0 : index
      %32 = vector.load %arg4[%c0_24, %c0_25] : memref<1x128xf32, #tpu.memory_space<vmem>>, vector<1x128xf32>
      %33 = arith.mulf %32, %31 : vector<1x128xf32>
      %c0_26 = arith.constant 0 : index
      %c0_27 = arith.constant 0 : index
      %34 = vector.load %arg7[%c0_26, %c0_27] : memref<1x128xf32, #tpu.memory_space<vmem>>, vector<1x128xf32>
      tpu.vector_store %arg7[%c0_26, %c0_27], %33 {strides = array<i32>} : memref<1x128xf32, #tpu.memory_space<vmem>>, vector<1x128xf32>,
      %c0_28 = arith.constant 0 : index
      %c0_29 = arith.constant 0 : index
      %35 = vector.load %arg5[%c0_28, %c0_29] : memref<1x128xf32, #tpu.memory_space<vmem>>, vector<1x128xf32>
      %36 = arith.mulf %23, %33 : vector<1x128xf32>
      %37 = arith.subf %35, %36 : vector<1x128xf32>
      %c0_30 = arith.constant 0 : index
      %c0_31 = arith.constant 0 : index
      %38 = vector.load %arg8[%c0_30, %c0_31] : memref<1x128xf32, #tpu.memory_space<vmem>>, vector<1x128xf32>
      tpu.vector_store %arg8[%c0_30, %c0_31], %37 {strides = array<i32>} : memref<1x128xf32, #tpu.memory_space<vmem>>, vector<1x128xf32>,
    } else {
    }
    return
  }
  func.func @transform_0(%arg0: i32, %arg1: i32) -> (i32, i32) {
    %c0_i32 = arith.constant 0 : i32
    %c0_i32_0 = arith.constant 0 : i32
    return %arg1, %c0_i32 : i32, i32
  }
  func.func @transform_1(%arg0: i32, %arg1: i32) -> (i32, i32) {
    %c0_i32 = arith.constant 0 : i32
    %c0_i32_0 = arith.constant 0 : i32
    return %c0_i32, %arg0 : i32, i32
  }
  func.func @transform_2(%arg0: i32, %arg1: i32) -> (i32, i32) {
    %c0_i32 = arith.constant 0 : i32
    %c0_i32_0 = arith.constant 0 : i32
    return %c0_i32, %arg0 : i32, i32
  }
  func.func @transform_3(%arg0: i32, %arg1: i32) -> (i32, i32) {
    %c0_i32 = arith.constant 0 : i32
    %c0_i32_0 = arith.constant 0 : i32
    return %c0_i32, %arg0 : i32, i32
  }
  func.func @transform_4(%arg0: i32, %arg1: i32) -> (i32, i32) {
    %c0_i32 = arith.constant 0 : i32
    return %arg1, %arg0 : i32, i32
  }
  func.func @transform_5(%arg0: i32, %arg1: i32) -> (i32, i32) {
    %c0_i32 = arith.constant 0 : i32
    %c0_i32_0 = arith.constant 0 : i32
    return %c0_i32, %arg0 : i32, i32
  }
  func.func @transform_6(%arg0: i32, %arg1: i32) -> (i32, i32) {
    %c0_i32 = arith.constant 0 : i32
    %c0_i32_0 = arith.constant 0 : i32
    return %c0_i32, %arg0 : i32, i32
  }
}

</mosaic_0001>

<bundles_post_ra>
// kernel: conv_bn_act.3
= control target key start
LH: loop header
LB: loop body
LE: loop exit
PB: predicated region body
PF: predicated region fallthrough
CT: control target
= control target key end

     0   :  { %s1030_s0 = inlined_call_operand.vmem [shape: f32[512,128], index: 0, kind: input, shape index: {}, may-alias: {0,3}]   ;;  %s1031_s1 = inlined_call_operand.vmem [shape: f32[1,128], index: 1, kind: input, shape index: {}]   ;;  %s1032_s2 = inlined_call_operand.vmem [shape: f32[1,128], index: 2, kind: input, shape index: {}]   ;;  %s1033_s3 = inlined_call_operand.vmem [shape: f32[512,128], index: 3, kind: output, shape index: {}, may-alias: {0,3}]  }
   0x1   :  { %v14_v0 = vld [vmem:[%s1030_s0] sm:$0xff]  ;;  %v15_v4 = vld [vmem:[%s1030_s0 + $0x8] sm:$0xff]  ;;  %v16_v5 = vld [vmem:[%s1030_s0 + $0x10] sm:$0xff] }
   0x2   :  { %v508_v1 = vld [vmem:[%s1031_s1] ss:$0 sm:$0xff]  ;;  %v17_v6 = vld [vmem:[%s1030_s0 + $0x18] sm:$0xff]  ;;  %v19_v11 = vld [vmem:[%s1030_s0 + $0x28] sm:$0xff] }
   0x3   :  { %v513_v2 = vld [vmem:[%s1032_s2] ss:$0 sm:$0xff]  ;;  %v85_v3 = vmul.f32 %v508_v1, %v14_v0  ;;  %v86_v7 = vmul.f32 %v508_v1, %v15_v4  ;;  %v87_v8 = vmul.f32 %v508_v1, %v16_v5  ;;  %v88_v9 = vmul.f32 %v508_v1, %v17_v6  ;;  %v20_v12 = vld [vmem:[%s1030_s0 + $0x30] sm:$0xff]  ;;  %v21_v17 = vld [vmem:[%s1030_s0 + $0x38] sm:$0xff] }
   0x4   :  { %v18_v10 = vld [vmem:[%s1030_s0 + $0x20] sm:$0xff]  ;;  %v90_v15 = vmul.f32 %v508_v1, %v19_v11  ;;  %v91_v16 = vmul.f32 %v508_v1, %v20_v12  ;;  %v92_v21 = vmul.f32 %v508_v1, %v21_v17  ;;  %v23_v30 = vld [vmem:[%s1030_s0 + $0x48] sm:$0xff]  ;;  %v24_v31 = vld [vmem:[%s1030_s0 + $0x50] sm:$0xff] }
   0x5   :  { %v156_v13 = vadd.f32 %v513_v2, %v85_v3  ;;  %v89_v14 = vmul.f32 %v508_v1, %v18_v10  ;;  %v157_v18 = vadd.f32 %v513_v2, %v86_v7  ;;  %v158_v19 = vadd.f32 %v513_v2, %v87_v8  ;;  %v22_v25 = vld [vmem:[%s1030_s0 + $0x40] sm:$0xff] }
   0x6   :  { %v159_v20 = vadd.f32 %v513_v2, %v88_v9  ;;  %v161_v24 = vadd.f32 %v513_v2, %v90_v15  ;;  %v162_v37 = vadd.f32 %v513_v2, %v91_v16  ;;  %v163_v38 = vadd.f32 %v513_v2, %v92_v21 }
   0x7   :  { %vm220_vm0 = vcmp.gt.f32.partialorder %v156_v13, 0.0  ;;  %v284_v22 = vmul.f32 0.01, %v156_v13  ;;  %v160_v23 = vadd.f32 %v513_v2, %v89_v14  ;;  %vm221_vm1 = vcmp.gt.f32.partialorder %v157_v18, 0.0 }
   0x8   :  { %v285_v26 = vmul.f32 0.01, %v157_v18  ;;  %vm222_vm2 = vcmp.gt.f32.partialorder %v158_v19, 0.0  ;;  %v286_v27 = vmul.f32 0.01, %v158_v19  ;;  %vm223_vm3 = vcmp.gt.f32.partialorder %v159_v20, 0.0 }
   0x9   :  { %v348_v28 = vsel %vm220_vm0, %v156_v13, %v284_v22  ;;  %v287_v29 = vmul.f32 0.01, %v159_v20  ;;  %vm224_vm4 = vcmp.gt.f32.partialorder %v160_v23, 0.0  ;;  %v288_v34 = vmul.f32 0.01, %v160_v23 }
   0xa   :  { %412 = vst [vmem:[%s1033_s3] sm:$0xff] %v348_v28  ;;  %v349_v32 = vsel %vm221_vm1, %v157_v18, %v285_v26  ;;  %v350_v33 = vsel %vm222_vm2, %v158_v19, %v286_v27  ;;  %vm225_vm5 = vcmp.gt.f32.partialorder %v161_v24, 0.0  ;;  %v289_v36 = vmul.f32 0.01, %v161_v24 }
   0xb   :  { %413 = vst [vmem:[%s1033_s3 + $0x8] sm:$0xff] %v349_v32  ;;  %414 = vst [vmem:[%s1033_s3 + $0x10] sm:$0xff] %v350_v33  ;;  %v351_v35 = vsel %vm223_vm3, %v159_v20, %v287_v29  ;;  %v352_v39 = vsel %vm224_vm4, %v160_v23, %v288_v34  ;;  %v93_v40 = vmul.f32 %v508_v1, %v22_v25  ;;  %vm226_vm6 = vcmp.gt.f32.partialorder %v162_v37, 0.0 }
   0xc   :  { %415 = vst [vmem:[%s1033_s3 + $0x18] sm:$0xff] %v351_v35  ;;  %v94_v41 = vmul.f32 %v508_v1, %v23_v30  ;;  %v95_v42 = vmul.f32 %v508_v1, %v24_v31  ;;  %v353_v46 = vsel %vm225_vm5, %v161_v24, %v289_v36  ;;  %v290_v47 = vmul.f32 0.01, %v162_v37 }
   0xd   :  { %vm227_vm7 = vcmp.gt.f32.partialorder %v163_v38, 0.0  ;;  %v291_v48 = vmul.f32 0.01, %v163_v38  ;;  %v164_v49 = vadd.f32 %v513_v2, %v93_v40 }
   0xe   :  { %v165_v50 = vadd.f32 %v513_v2, %v94_v41  ;;  %v166_v51 = vadd.f32 %v513_v2, %v95_v42  ;;  %v354_v52 = vsel %vm226_vm6, %v162_v37, %v290_v47 }
   0xf   :  { %v355_v57 = vsel %vm227_vm7, %v163_v38, %v291_v48  ;;  %vm228_vm8 = vcmp.gt.f32.partialorder %v164_v49, 0.0  ;;  %v292_v58 = vmul.f32 0.01, %v164_v49 }
  0x10   :  { %vm229_vm9 = vcmp.gt.f32.partialorder %v165_v50, 0.0  ;;  %v293_v59 = vmul.f32 0.01, %v165_v50  ;;  %vm230_vm10 = vcmp.gt.f32.partialorder %v166_v51, 0.0  ;;  %v294_v60 = vmul.f32 0.01, %v166_v51 }
  0x11   :  { %v356_v62 = vsel %vm228_vm8, %v164_v49, %v292_v58 }
  0x12   :  { %v357_v6 = vsel %vm229_vm9, %v165_v50, %v293_v59  ;;  %v358_v7 = vsel %vm230_vm10, %v166_v51, %v294_v60 }
  0x13   :  { %v25_v43 = vld [vmem:[%s1030_s0 + $0x58] sm:$0xff]  ;;  %v26_v44 = vld [vmem:[%s1030_s0 + $0x60] sm:$0xff]  ;;  %v27_v45 = vld [vmem:[%s1030_s0 + $0x68] sm:$0xff] }
  0x14   :  { %416 = vst [vmem:[%s1033_s3 + $0x20] sm:$0xff] %v352_v39  ;;  %417 = vst [vmem:[%s1033_s3 + $0x28] sm:$0xff] %v353_v46  ;;  %v96_v53 = vmul.f32 %v508_v1, %v25_v43  ;;  %v97_v54 = vmul.f32 %v508_v1, %v26_v44  ;;  %v98_v55 = vmul.f32 %v508_v1, %v27_v45 }
  0x16   :  { %v167_v61 = vadd.f32 %v513_v2, %v96_v53  ;;  %v168_v63 = vadd.f32 %v513_v2, %v97_v54  ;;  %v169_v0 = vadd.f32 %v513_v2, %v98_v55 }
  0x18   :  { %vm231_vm11 = vcmp.gt.f32.partialorder %v167_v61, 0.0  ;;  %v295_v8 = vmul.f32 0.01, %v167_v61  ;;  %vm232_vm12 = vcmp.gt.f32.partialorder %v168_v63, 0.0  ;;  %v296_v11 = vmul.f32 0.01, %v168_v63 }
  0x19   :  { %vm233_vm13 = vcmp.gt.f32.partialorder %v169_v0, 0.0  ;;  %v297_v12 = vmul.f32 0.01, %v169_v0 }
  0x1a   :  { %v359_v13 = vsel %vm231_vm11, %v167_v61, %v295_v8  ;;  %v360_v19 = vsel %vm232_vm12, %v168_v63, %v296_v11 }
  0x1b   :  { %v28_v56 = vld [vmem:[%s1030_s0 + $0x70] sm:$0xff]  ;;  %v361_v20 = vsel %vm233_vm13, %v169_v0, %v297_v12 }
  0x1c   :  { %418 = vst [vmem:[%s1033_s3 + $0x30] sm:$0xff] %v354_v52  ;;  %419 = vst [vmem:[%s1033_s3 + $0x38] sm:$0xff] %v355_v57  ;;  %v99_v3 = vmul.f32 %v508_v1, %v28_v56 }
  0x1e   :  { %v170_v14 = vadd.f32 %v513_v2, %v99_v3 }
  0x20   :  { %vm234_vm14 = vcmp.gt.f32.partialorder %v170_v14, 0.0  ;;  %v298_v23 = vmul.f32 0.01, %v170_v14 }
  0x22   :  { %v362_v30 = vsel %vm234_vm14, %v170_v14, %v298_v23 }
  0x23   :  { %v29_v4 = vld [vmem:[%s1030_s0 + $0x78] sm:$0xff]  ;;  %v30_v5 = vld [vmem:[%s1030_s0 + $0x80] sm:$0xff] }
  0x24   :  { %420 = vst [vmem:[%s1033_s3 + $0x40] sm:$0xff] %v356_v62  ;;  %v100_v15 = vmul.f32 %v508_v1, %v29_v4  ;;  %v101_v16 = vmul.f32 %v508_v1, %v30_v5 }
  0x26   :  { %v171_v24 = vadd.f32 %v513_v2, %v100_v15  ;;  %v172_v25 = vadd.f32 %v513_v2, %v101_v16 }
  0x28   :  { %vm235_vm15 = vcmp.gt.f32.partialorder %v171_v24, 0.0  ;;  %v299_v31 = vmul.f32 0.01, %v171_v24  ;;  %vm236_vm0 = vcmp.gt.f32.partialorder %v172_v25, 0.0  ;;  %v300_v34 = vmul.f32 0.01, %v172_v25 }
  0x2a   :  { %v363_v36 = vsel %vm235_vm15, %v171_v24, %v299_v31  ;;  %v364_v41 = vsel %vm236_vm0, %v172_v25, %v300_v34 }
  0x2b   :  { %v31_v9 = vld [vmem:[%s1030_s0 + $0x88] sm:$0xff]  ;;  %v32_v10 = vld [vmem:[%s1030_s0 + $0x90] sm:$0xff] }
  0x2c   :  { %421 = vst [vmem:[%s1033_s3 + $0x48] sm:$0xff] %v357_v6  ;;  %422 = vst [vmem:[%s1033_s3 + $0x50] sm:$0xff] %v358_v7  ;;  %v102_v21 = vmul.f32 %v508_v1, %v31_v9  ;;  %v103_v22 = vmul.f32 %v508_v1, %v32_v10 }
  0x2e   :  { %v173_v26 = vadd.f32 %v513_v2, %v102_v21  ;;  %v174_v27 = vadd.f32 %v513_v2, %v103_v22 }
  0x30   :  { %vm237_vm1 = vcmp.gt.f32.partialorder %v173_v26, 0.0  ;;  %v301_v35 = vmul.f32 0.01, %v173_v26  ;;  %vm238_vm2 = vcmp.gt.f32.partialorder %v174_v27, 0.0  ;;  %v302_v37 = vmul.f32 0.01, %v174_v27 }
  0x32   :  { %v365_v42 = vsel %vm237_vm1, %v173_v26, %v301_v35  ;;  %v366_v48 = vsel %vm238_vm2, %v174_v27, %v302_v37 }
  0x33   :  { %v33_v17 = vld [vmem:[%s1030_s0 + $0x98] sm:$0xff]  ;;  %v34_v18 = vld [vmem:[%s1030_s0 + $0xa0] sm:$0xff] }
  0x34   :  { %423 = vst [vmem:[%s1033_s3 + $0x58] sm:$0xff] %v359_v13  ;;  %424 = vst [vmem:[%s1033_s3 + $0x60] sm:$0xff] %v360_v19  ;;  %v104_v28 = vmul.f32 %v508_v1, %v33_v17  ;;  %v105_v29 = vmul.f32 %v508_v1, %v34_v18 }
  0x35   :  { %425 = vst [vmem:[%s1033_s3 + $0x68] sm:$0xff] %v361_v20 }
  0x36   :  { %v175_v38 = vadd.f32 %v513_v2, %v104_v28  ;;  %v176_v39 = vadd.f32 %v513_v2, %v105_v29 }
  0x38   :  { %vm239_vm3 = vcmp.gt.f32.partialorder %v175_v38, 0.0  ;;  %v303_v49 = vmul.f32 0.01, %v175_v38  ;;  %vm240_vm4 = vcmp.gt.f32.partialorder %v176_v39, 0.0  ;;  %v304_v50 = vmul.f32 0.01, %v176_v39 }
  0x3a   :  { %v367_v54 = vsel %vm239_vm3, %v175_v38, %v303_v49  ;;  %v368_v60 = vsel %vm240_vm4, %v176_v39, %v304_v50 }
  0x3c   :  { %v35_v32 = vld [vmem:[%s1030_s0 + $0xa8] sm:$0xff]  ;;  %v36_v33 = vld [vmem:[%s1030_s0 + $0xb0] sm:$0xff] }
  0x3d   :  { %426 = vst [vmem:[%s1033_s3 + $0x70] sm:$0xff] %v362_v30  ;;  %v106_v43 = vmul.f32 %v508_v1, %v35_v32  ;;  %v107_v44 = vmul.f32 %v508_v1, %v36_v33 }
  0x3f   :  { %v177_v51 = vadd.f32 %v513_v2, %v106_v43  ;;  %v178_v52 = vadd.f32 %v513_v2, %v107_v44 }
  0x41   :  { %vm241_vm5 = vcmp.gt.f32.partialorder %v177_v51, 0.0  ;;  %v305_v61 = vmul.f32 0.01, %v177_v51  ;;  %vm242_vm6 = vcmp.gt.f32.partialorder %v178_v52, 0.0  ;;  %v306_v62 = vmul.f32 0.01, %v178_v52 }
  0x43   :  { %v369_v4 = vsel %vm241_vm5, %v177_v51, %v305_v61  ;;  %v370_v8 = vsel %vm242_vm6, %v178_v52, %v306_v62 }
  0x44   :  { %v37_v40 = vld [vmem:[%s1030_s0 + $0xb8] sm:$0xff] }
  0x45   :  { %427 = vst [vmem:[%s1033_s3 + $0x78] sm:$0xff] %v363_v36  ;;  %v108_v53 = vmul.f32 %v508_v1, %v37_v40 }
  0x47   :  { %v179_v63 = vadd.f32 %v513_v2, %v108_v53 }
  0x49   :  { %vm243_vm7 = vcmp.gt.f32.partialorder %v179_v63, 0.0  ;;  %v307_v9 = vmul.f32 0.01, %v179_v63 }
  0x4b   :  { %v371_v14 = vsel %vm243_vm7, %v179_v63, %v307_v9 }
  0x4c   :  { %v38_v45 = vld [vmem:[%s1030_s0 + $0xc0] sm:$0xff]  ;;  %v39_v46 = vld [vmem:[%s1030_s0 + $0xc8] sm:$0xff]  ;;  %v40_v47 = vld [vmem:[%s1030_s0 + $0xd0] sm:$0xff] }
  0x4d   :  { %428 = vst [vmem:[%s1033_s3 + $0x80] sm:$0xff] %v364_v41  ;;  %429 = vst [vmem:[%s1033_s3 + $0x88] sm:$0xff] %v365_v42  ;;  %v109_v55 = vmul.f32 %v508_v1, %v38_v45  ;;  %v110_v56 = vmul.f32 %v508_v1, %v39_v46  ;;  %v111_v57 = vmul.f32 %v508_v1, %v40_v47 }
  0x4e   :  { %430 = vst [vmem:[%s1033_s3 + $0x90] sm:$0xff] %v366_v48 }
  0x4f   :  { %v180_v0 = vadd.f32 %v513_v2, %v109_v55  ;;  %v181_v3 = vadd.f32 %v513_v2, %v110_v56  ;;  %v182_v5 = vadd.f32 %v513_v2, %v111_v57 }
  0x51   :  { %vm244_vm8 = vcmp.gt.f32.partialorder %v180_v0, 0.0  ;;  %v308_v12 = vmul.f32 0.01, %v180_v0  ;;  %vm245_vm9 = vcmp.gt.f32.partialorder %v181_v3, 0.0  ;;  %v309_v13 = vmul.f32 0.01, %v181_v3 }
  0x52   :  { %vm246_vm10 = vcmp.gt.f32.partialorder %v182_v5, 0.0  ;;  %v310_v15 = vmul.f32 0.01, %v182_v5 }
  0x53   :  { %v372_v19 = vsel %vm244_vm8, %v180_v0, %v308_v12  ;;  %v373_v20 = vsel %vm245_vm9, %v181_v3, %v309_v13 }
  0x54   :  { %v374_v26 = vsel %vm246_vm10, %v182_v5, %v310_v15 }
  0x55   :  { %v41_v58 = vld [vmem:[%s1030_s0 + $0xd8] sm:$0xff]  ;;  %v42_v59 = vld [vmem:[%s1030_s0 + $0xe0] sm:$0xff] }
  0x56   :  { %431 = vst [vmem:[%s1033_s3 + $0x98] sm:$0xff] %v367_v54  ;;  %432 = vst [vmem:[%s1033_s3 + $0xa0] sm:$0xff] %v368_v60  ;;  %v112_v6 = vmul.f32 %v508_v1, %v41_v58  ;;  %v113_v7 = vmul.f32 %v508_v1, %v42_v59 }
  0x57   :  { %433 = vst [vmem:[%s1033_s3 + $0xa8] sm:$0xff] %v369_v4 }
  0x58   :  { %v183_v16 = vadd.f32 %v513_v2, %v112_v6  ;;  %v184_v17 = vadd.f32 %v513_v2, %v113_v7 }
  0x5a   :  { %vm247_vm11 = vcmp.gt.f32.partialorder %v183_v16, 0.0  ;;  %v311_v27 = vmul.f32 0.01, %v183_v16  ;;  %vm248_vm12 = vcmp.gt.f32.partialorder %v184_v17, 0.0  ;;  %v312_v28 = vmul.f32 0.01, %v184_v17 }
  0x5c   :  { %v375_v32 = vsel %vm247_vm11, %v183_v16, %v311_v27  ;;  %v376_v38 = vsel %vm248_vm12, %v184_v17, %v312_v28 }
  0x5e   :  { %v43_v10 = vld [vmem:[%s1030_s0 + $0xe8] sm:$0xff]  ;;  %v44_v11 = vld [vmem:[%s1030_s0 + $0xf0] sm:$0xff] }
  0x5f   :  { %434 = vst [vmem:[%s1033_s3 + $0xb0] sm:$0xff] %v370_v8  ;;  %v114_v21 = vmul.f32 %v508_v1, %v43_v10  ;;  %v115_v22 = vmul.f32 %v508_v1, %v44_v11 }
  0x61   :  { %v185_v29 = vadd.f32 %v513_v2, %v114_v21  ;;  %v186_v30 = vadd.f32 %v513_v2, %v115_v22 }
  0x63   :  { %vm249_vm13 = vcmp.gt.f32.partialorder %v185_v29, 0.0  ;;  %v313_v39 = vmul.f32 0.01, %v185_v29  ;;  %vm250_vm14 = vcmp.gt.f32.partialorder %v186_v30, 0.0  ;;  %v314_v40 = vmul.f32 0.01, %v186_v30 }
  0x65   :  { %v377_v44 = vsel %vm249_vm13, %v185_v29, %v313_v39  ;;  %v378_v48 = vsel %vm250_vm14, %v186_v30, %v314_v40 }
  0x66   :  { %v45_v18 = vld [vmem:[%s1030_s0 + $0xf8] sm:$0xff] }
  0x67   :  { %435 = vst [vmem:[%s1033_s3 + $0xb8] sm:$0xff] %v371_v14  ;;  %v116_v31 = vmul.f32 %v508_v1, %v45_v18 }
  0x69   :  { %v187_v41 = vadd.f32 %v513_v2, %v116_v31 }
  0x6b   :  { %vm251_vm15 = vcmp.gt.f32.partialorder %v187_v41, 0.0  ;;  %v315_v49 = vmul.f32 0.01, %v187_v41 }
  0x6d   :  { %v379_v54 = vsel %vm251_vm15, %v187_v41, %v315_v49 }
  0x6e   :  { %v46_v23 = vld [vmem:[%s1030_s0 + $0x100] sm:$0xff]  ;;  %v47_v24 = vld [vmem:[%s1030_s0 + $0x108] sm:$0xff]  ;;  %v48_v25 = vld [vmem:[%s1030_s0 + $0x110] sm:$0xff] }
  0x6f   :  { %436 = vst [vmem:[%s1033_s3 + $0xc0] sm:$0xff] %v372_v19  ;;  %437 = vst [vmem:[%s1033_s3 + $0xc8] sm:$0xff] %v373_v20  ;;  %v117_v33 = vmul.f32 %v508_v1, %v46_v23  ;;  %v118_v34 = vmul.f32 %v508_v1, %v47_v24  ;;  %v119_v35 = vmul.f32 %v508_v1, %v48_v25 }
  0x70   :  { %438 = vst [vmem:[%s1033_s3 + $0xd0] sm:$0xff] %v374_v26 }
  0x71   :  { %v188_v42 = vadd.f32 %v513_v2, %v117_v33  ;;  %v189_v43 = vadd.f32 %v513_v2, %v118_v34  ;;  %v190_v45 = vadd.f32 %v513_v2, %v119_v35 }
  0x73   :  { %vm252_vm0 = vcmp.gt.f32.partialorder %v188_v42, 0.0  ;;  %v316_v52 = vmul.f32 0.01, %v188_v42  ;;  %vm253_vm1 = vcmp.gt.f32.partialorder %v189_v43, 0.0  ;;  %v317_v53 = vmul.f32 0.01, %v189_v43 }
  0x74   :  { %vm254_vm2 = vcmp.gt.f32.partialorder %v190_v45, 0.0  ;;  %v318_v55 = vmul.f32 0.01, %v190_v45 }
  0x75   :  { %v380_v59 = vsel %vm252_vm0, %v188_v42, %v316_v52  ;;  %v381_v60 = vsel %vm253_vm1, %v189_v43, %v317_v53 }
  0x76   :  { %v382_v4 = vsel %vm254_vm2, %v190_v45, %v318_v55 }
  0x77   :  { %v49_v36 = vld [vmem:[%s1030_s0 + $0x118] sm:$0xff]  ;;  %v50_v37 = vld [vmem:[%s1030_s0 + $0x120] sm:$0xff] }
  0x78   :  { %439 = vst [vmem:[%s1033_s3 + $0xd8] sm:$0xff] %v375_v32  ;;  %440 = vst [vmem:[%s1033_s3 + $0xe0] sm:$0xff] %v376_v38  ;;  %v120_v46 = vmul.f32 %v508_v1, %v49_v36  ;;  %v121_v47 = vmul.f32 %v508_v1, %v50_v37 }
  0x79   :  { %441 = vst [vmem:[%s1033_s3 + $0xe8] sm:$0xff] %v377_v44 }
  0x7a   :  { %v191_v56 = vadd.f32 %v513_v2, %v120_v46  ;;  %v192_v57 = vadd.f32 %v513_v2, %v121_v47 }
  0x7c   :  { %vm255_vm3 = vcmp.gt.f32.partialorder %v191_v56, 0.0  ;;  %v319_v5 = vmul.f32 0.01, %v191_v56  ;;  %vm256_vm4 = vcmp.gt.f32.partialorder %v192_v57, 0.0  ;;  %v320_v6 = vmul.f32 0.01, %v192_v57 }
  0x7e   :  { %v383_v10 = vsel %vm255_vm3, %v191_v56, %v319_v5  ;;  %v384_v16 = vsel %vm256_vm4, %v192_v57, %v320_v6 }
  0x80   :  { %v51_v50 = vld [vmem:[%s1030_s0 + $0x128] sm:$0xff]  ;;  %v52_v51 = vld [vmem:[%s1030_s0 + $0x130] sm:$0xff] }
  0x81   :  { %442 = vst [vmem:[%s1033_s3 + $0xf0] sm:$0xff] %v378_v48  ;;  %v122_v61 = vmul.f32 %v508_v1, %v51_v50  ;;  %v123_v62 = vmul.f32 %v508_v1, %v52_v51 }
  0x83   :  { %v193_v7 = vadd.f32 %v513_v2, %v122_v61  ;;  %v194_v8 = vadd.f32 %v513_v2, %v123_v62 }
  0x85   :  { %vm257_vm5 = vcmp.gt.f32.partialorder %v193_v7, 0.0  ;;  %v321_v17 = vmul.f32 0.01, %v193_v7  ;;  %vm258_vm6 = vcmp.gt.f32.partialorder %v194_v8, 0.0  ;;  %v322_v18 = vmul.f32 0.01, %v194_v8 }
  0x87   :  { %v385_v22 = vsel %vm257_vm5, %v193_v7, %v321_v17  ;;  %v386_v26 = vsel %vm258_vm6, %v194_v8, %v322_v18 }
  0x88   :  { %v53_v58 = vld [vmem:[%s1030_s0 + $0x138] sm:$0xff] }
  0x89   :  { %443 = vst [vmem:[%s1033_s3 + $0xf8] sm:$0xff] %v379_v54  ;;  %v124_v9 = vmul.f32 %v508_v1, %v53_v58 }
  0x8b   :  { %v195_v19 = vadd.f32 %v513_v2, %v124_v9 }
  0x8d   :  { %vm259_vm7 = vcmp.gt.f32.partialorder %v195_v19, 0.0  ;;  %v323_v27 = vmul.f32 0.01, %v195_v19 }
  0x8f   :  { %v387_v32 = vsel %vm259_vm7, %v195_v19, %v323_v27 }
  0x90   :  { %v54_v63 = vld [vmem:[%s1030_s0 + $0x140] sm:$0xff]  ;;  %v55_v0 = vld [vmem:[%s1030_s0 + $0x148] sm:$0xff]  ;;  %v56_v3 = vld [vmem:[%s1030_s0 + $0x150] sm:$0xff] }
  0x91   :  { %444 = vst [vmem:[%s1033_s3 + $0x100] sm:$0xff] %v380_v59  ;;  %445 = vst [vmem:[%s1033_s3 + $0x108] sm:$0xff] %v381_v60  ;;  %v125_v11 = vmul.f32 %v508_v1, %v54_v63  ;;  %v126_v12 = vmul.f32 %v508_v1, %v55_v0  ;;  %v127_v13 = vmul.f32 %v508_v1, %v56_v3 }
  0x92   :  { %446 = vst [vmem:[%s1033_s3 + $0x110] sm:$0xff] %v382_v4 }
  0x93   :  { %v196_v20 = vadd.f32 %v513_v2, %v125_v11  ;;  %v197_v21 = vadd.f32 %v513_v2, %v126_v12  ;;  %v198_v23 = vadd.f32 %v513_v2, %v127_v13 }
  0x95   :  { %vm260_vm8 = vcmp.gt.f32.partialorder %v196_v20, 0.0  ;;  %v324_v30 = vmul.f32 0.01, %v196_v20  ;;  %vm261_vm9 = vcmp.gt.f32.partialorder %v197_v21, 0.0  ;;  %v325_v31 = vmul.f32 0.01, %v197_v21 }
  0x96   :  { %vm262_vm10 = vcmp.gt.f32.partialorder %v198_v23, 0.0  ;;  %v326_v33 = vmul.f32 0.01, %v198_v23 }
  0x97   :  { %v388_v37 = vsel %vm260_vm8, %v196_v20, %v324_v30  ;;  %v389_v38 = vsel %vm261_vm9, %v197_v21, %v325_v31 }
  0x98   :  { %v390_v44 = vsel %vm262_vm10, %v198_v23, %v326_v33 }
  0x99   :  { %v57_v14 = vld [vmem:[%s1030_s0 + $0x158] sm:$0xff]  ;;  %v58_v15 = vld [vmem:[%s1030_s0 + $0x160] sm:$0xff] }
  0x9a   :  { %447 = vst [vmem:[%s1033_s3 + $0x118] sm:$0xff] %v383_v10  ;;  %448 = vst [vmem:[%s1033_s3 + $0x120] sm:$0xff] %v384_v16  ;;  %v128_v24 = vmul.f32 %v508_v1, %v57_v14  ;;  %v129_v25 = vmul.f32 %v508_v1, %v58_v15 }
  0x9b   :  { %449 = vst [vmem:[%s1033_s3 + $0x128] sm:$0xff] %v385_v22 }
  0x9c   :  { %v199_v34 = vadd.f32 %v513_v2, %v128_v24  ;;  %v200_v35 = vadd.f32 %v513_v2, %v129_v25 }
  0x9e   :  { %vm263_vm11 = vcmp.gt.f32.partialorder %v199_v34, 0.0  ;;  %v327_v45 = vmul.f32 0.01, %v199_v34  ;;  %vm264_vm12 = vcmp.gt.f32.partialorder %v200_v35, 0.0  ;;  %v328_v46 = vmul.f32 0.01, %v200_v35 }
  0xa0   :  { %v391_v50 = vsel %vm263_vm11, %v199_v34, %v327_v45  ;;  %v392_v56 = vsel %vm264_vm12, %v200_v35, %v328_v46 }
  0xa2   :  { %v59_v28 = vld [vmem:[%s1030_s0 + $0x168] sm:$0xff]  ;;  %v60_v29 = vld [vmem:[%s1030_s0 + $0x170] sm:$0xff] }
  0xa3   :  { %450 = vst [vmem:[%s1033_s3 + $0x130] sm:$0xff] %v386_v26  ;;  %v130_v39 = vmul.f32 %v508_v1, %v59_v28  ;;  %v131_v40 = vmul.f32 %v508_v1, %v60_v29 }
  0xa5   :  { %v201_v47 = vadd.f32 %v513_v2, %v130_v39  ;;  %v202_v48 = vadd.f32 %v513_v2, %v131_v40 }
  0xa7   :  { %vm265_vm13 = vcmp.gt.f32.partialorder %v201_v47, 0.0  ;;  %v329_v57 = vmul.f32 0.01, %v201_v47  ;;  %vm266_vm14 = vcmp.gt.f32.partialorder %v202_v48, 0.0  ;;  %v330_v58 = vmul.f32 0.01, %v202_v48 }
  0xa9   :  { %v393_v62 = vsel %vm265_vm13, %v201_v47, %v329_v57  ;;  %v394_v4 = vsel %vm266_vm14, %v202_v48, %v330_v58 }
  0xaa   :  { %v61_v36 = vld [vmem:[%s1030_s0 + $0x178] sm:$0xff] }
  0xab   :  { %451 = vst [vmem:[%s1033_s3 + $0x138] sm:$0xff] %v387_v32  ;;  %v132_v49 = vmul.f32 %v508_v1, %v61_v36 }
  0xad   :  { %v203_v59 = vadd.f32 %v513_v2, %v132_v49 }
  0xaf   :  { %vm267_vm15 = vcmp.gt.f32.partialorder %v203_v59, 0.0  ;;  %v331_v5 = vmul.f32 0.01, %v203_v59 }
  0xb1   :  { %v395_v10 = vsel %vm267_vm15, %v203_v59, %v331_v5 }
  0xb2   :  { %v62_v41 = vld [vmem:[%s1030_s0 + $0x180] sm:$0xff]  ;;  %v63_v42 = vld [vmem:[%s1030_s0 + $0x188] sm:$0xff]  ;;  %v64_v43 = vld [vmem:[%s1030_s0 + $0x190] sm:$0xff] }
  0xb3   :  { %452 = vst [vmem:[%s1033_s3 + $0x140] sm:$0xff] %v388_v37  ;;  %453 = vst [vmem:[%s1033_s3 + $0x148] sm:$0xff] %v389_v38  ;;  %v133_v51 = vmul.f32 %v508_v1, %v62_v41  ;;  %v134_v52 = vmul.f32 %v508_v1, %v63_v42  ;;  %v135_v53 = vmul.f32 %v508_v1, %v64_v43 }
  0xb4   :  { %454 = vst [vmem:[%s1033_s3 + $0x150] sm:$0xff] %v390_v44 }
  0xb5   :  { %v204_v60 = vadd.f32 %v513_v2, %v133_v51  ;;  %v205_v61 = vadd.f32 %v513_v2, %v134_v52  ;;  %v206_v63 = vadd.f32 %v513_v2, %v135_v53 }
  0xb7   :  { %vm268_vm0 = vcmp.gt.f32.partialorder %v204_v60, 0.0  ;;  %v332_v8 = vmul.f32 0.01, %v204_v60  ;;  %vm269_vm1 = vcmp.gt.f32.partialorder %v205_v61, 0.0  ;;  %v333_v9 = vmul.f32 0.01, %v205_v61 }
  0xb8   :  { %vm270_vm2 = vcmp.gt.f32.partialorder %v206_v63, 0.0  ;;  %v334_v11 = vmul.f32 0.01, %v206_v63 }
  0xb9   :  { %v396_v15 = vsel %vm268_vm0, %v204_v60, %v332_v8  ;;  %v397_v16 = vsel %vm269_vm1, %v205_v61, %v333_v9 }
  0xba   :  { %v398_v22 = vsel %vm270_vm2, %v206_v63, %v334_v11 }
  0xbb   :  { %v65_v54 = vld [vmem:[%s1030_s0 + $0x198] sm:$0xff]  ;;  %v66_v55 = vld [vmem:[%s1030_s0 + $0x1a0] sm:$0xff] }
  0xbc   :  { %455 = vst [vmem:[%s1033_s3 + $0x158] sm:$0xff] %v391_v50  ;;  %456 = vst [vmem:[%s1033_s3 + $0x160] sm:$0xff] %v392_v56  ;;  %v136_v0 = vmul.f32 %v508_v1, %v65_v54  ;;  %v137_v3 = vmul.f32 %v508_v1, %v66_v55 }
  0xbd   :  { %457 = vst [vmem:[%s1033_s3 + $0x168] sm:$0xff] %v393_v62 }
  0xbe   :  { %v207_v12 = vadd.f32 %v513_v2, %v136_v0  ;;  %v208_v13 = vadd.f32 %v513_v2, %v137_v3 }
  0xc0   :  { %vm271_vm3 = vcmp.gt.f32.partialorder %v207_v12, 0.0  ;;  %v335_v23 = vmul.f32 0.01, %v207_v12  ;;  %vm272_vm4 = vcmp.gt.f32.partialorder %v208_v13, 0.0  ;;  %v336_v24 = vmul.f32 0.01, %v208_v13 }
  0xc2   :  { %v399_v28 = vsel %vm271_vm3, %v207_v12, %v335_v23  ;;  %v400_v34 = vsel %vm272_vm4, %v208_v13, %v336_v24 }
  0xc4   :  { %v67_v6 = vld [vmem:[%s1030_s0 + $0x1a8] sm:$0xff]  ;;  %v68_v7 = vld [vmem:[%s1030_s0 + $0x1b0] sm:$0xff] }
  0xc5   :  { %458 = vst [vmem:[%s1033_s3 + $0x170] sm:$0xff] %v394_v4  ;;  %v138_v17 = vmul.f32 %v508_v1, %v67_v6  ;;  %v139_v18 = vmul.f32 %v508_v1, %v68_v7 }
  0xc7   :  { %v209_v25 = vadd.f32 %v513_v2, %v138_v17  ;;  %v210_v26 = vadd.f32 %v513_v2, %v139_v18 }
  0xc9   :  { %vm273_vm5 = vcmp.gt.f32.partialorder %v209_v25, 0.0  ;;  %v337_v35 = vmul.f32 0.01, %v209_v25  ;;  %vm274_vm6 = vcmp.gt.f32.partialorder %v210_v26, 0.0  ;;  %v338_v36 = vmul.f32 0.01, %v210_v26 }
  0xcb   :  { %v401_v40 = vsel %vm273_vm5, %v209_v25, %v337_v35  ;;  %v402_v44 = vsel %vm274_vm6, %v210_v26, %v338_v36 }
  0xcc   :  { %v69_v14 = vld [vmem:[%s1030_s0 + $0x1b8] sm:$0xff] }
  0xcd   :  { %459 = vst [vmem:[%s1033_s3 + $0x178] sm:$0xff] %v395_v10  ;;  %v140_v27 = vmul.f32 %v508_v1, %v69_v14 }
  0xcf   :  { %v211_v37 = vadd.f32 %v513_v2, %v140_v27 }
  0xd1   :  { %vm275_vm7 = vcmp.gt.f32.partialorder %v211_v37, 0.0  ;;  %v339_v45 = vmul.f32 0.01, %v211_v37 }
  0xd3   :  { %v403_v50 = vsel %vm275_vm7, %v211_v37, %v339_v45 }
  0xd4   :  { %v70_v19 = vld [vmem:[%s1030_s0 + $0x1c0] sm:$0xff]  ;;  %v71_v20 = vld [vmem:[%s1030_s0 + $0x1c8] sm:$0xff]  ;;  %v72_v21 = vld [vmem:[%s1030_s0 + $0x1d0] sm:$0xff] }
  0xd5   :  { %460 = vst [vmem:[%s1033_s3 + $0x180] sm:$0xff] %v396_v15  ;;  %461 = vst [vmem:[%s1033_s3 + $0x188] sm:$0xff] %v397_v16  ;;  %v141_v29 = vmul.f32 %v508_v1, %v70_v19  ;;  %v142_v30 = vmul.f32 %v508_v1, %v71_v20  ;;  %v143_v31 = vmul.f32 %v508_v1, %v72_v21 }
  0xd6   :  { %462 = vst [vmem:[%s1033_s3 + $0x190] sm:$0xff] %v398_v22 }
  0xd7   :  { %v212_v38 = vadd.f32 %v513_v2, %v141_v29  ;;  %v213_v39 = vadd.f32 %v513_v2, %v142_v30  ;;  %v214_v41 = vadd.f32 %v513_v2, %v143_v31 }
  0xd9   :  { %vm276_vm8 = vcmp.gt.f32.partialorder %v212_v38, 0.0  ;;  %v340_v48 = vmul.f32 0.01, %v212_v38  ;;  %vm277_vm9 = vcmp.gt.f32.partialorder %v213_v39, 0.0  ;;  %v341_v49 = vmul.f32 0.01, %v213_v39 }
  0xda   :  { %vm278_vm10 = vcmp.gt.f32.partialorder %v214_v41, 0.0  ;;  %v342_v51 = vmul.f32 0.01, %v214_v41 }
  0xdb   :  { %v404_v55 = vsel %vm276_vm8, %v212_v38, %v340_v48  ;;  %v405_v56 = vsel %vm277_vm9, %v213_v39, %v341_v49 }
  0xdc   :  { %v406_v59 = vsel %vm278_vm10, %v214_v41, %v342_v51 }
  0xdd   :  { %v73_v32 = vld [vmem:[%s1030_s0 + $0x1d8] sm:$0xff]  ;;  %v74_v33 = vld [vmem:[%s1030_s0 + $0x1e0] sm:$0xff] }
  0xde   :  { %463 = vst [vmem:[%s1033_s3 + $0x198] sm:$0xff] %v399_v28  ;;  %464 = vst [vmem:[%s1033_s3 + $0x1a0] sm:$0xff] %v400_v34  ;;  %v144_v42 = vmul.f32 %v508_v1, %v73_v32  ;;  %v145_v43 = vmul.f32 %v508_v1, %v74_v33 }
  0xdf   :  { %465 = vst [vmem:[%s1033_s3 + $0x1a8] sm:$0xff] %v401_v40 }
  0xe0   :  { %v215_v52 = vadd.f32 %v513_v2, %v144_v42  ;;  %v216_v53 = vadd.f32 %v513_v2, %v145_v43 }
  0xe2   :  { %vm279_vm11 = vcmp.gt.f32.partialorder %v215_v52, 0.0  ;;  %v343_v60 = vmul.f32 0.01, %v215_v52  ;;  %vm280_vm12 = vcmp.gt.f32.partialorder %v216_v53, 0.0  ;;  %v344_v61 = vmul.f32 0.01, %v216_v53 }
  0xe4   :  { %v407_v3 = vsel %vm279_vm11, %v215_v52, %v343_v60  ;;  %v408_v4 = vsel %vm280_vm12, %v216_v53, %v344_v61 }
  0xe6   :  { %v75_v46 = vld [vmem:[%s1030_s0 + $0x1e8] sm:$0xff]  ;;  %v76_v47 = vld [vmem:[%s1030_s0 + $0x1f0] sm:$0xff] }
  0xe7   :  { %466 = vst [vmem:[%s1033_s3 + $0x1b0] sm:$0xff] %v402_v44  ;;  %v146_v57 = vmul.f32 %v508_v1, %v75_v46  ;;  %v147_v58 = vmul.f32 %v508_v1, %v76_v47 }
  0xe9   :  { %v217_v62 = vadd.f32 %v513_v2, %v146_v57  ;;  %v218_v63 = vadd.f32 %v513_v2, %v147_v58 }
  0xeb   :  { %vm281_vm13 = vcmp.gt.f32.partialorder %v217_v62, 0.0  ;;  %v345_v5 = vmul.f32 0.01, %v217_v62  ;;  %vm282_vm14 = vcmp.gt.f32.partialorder %v218_v63, 0.0  ;;  %v346_v6 = vmul.f32 0.01, %v218_v63 }
  0xed   :  { %v409_v8 = vsel %vm281_vm13, %v217_v62, %v345_v5 }
  0xee   :  { %v77_v54 = vld [vmem:[%s1030_s0 + $0x1f8] sm:$0xff] }
  0xef   :  { %467 = vst [vmem:[%s1033_s3 + $0x1b8] sm:$0xff] %v403_v50  ;;  %468 = vst [vmem:[%s1033_s3 + $0x1c0] sm:$0xff] %v404_v55  ;;  %v148_v0 = vmul.f32 %v508_v1, %v77_v54  ;;  %v410_v1 = vsel %vm282_vm14, %v218_v63, %v346_v6 }
  0xf0   :  { %469 = vst [vmem:[%s1033_s3 + $0x1c8] sm:$0xff] %v405_v56  ;;  %470 = vst [vmem:[%s1033_s3 + $0x1d0] sm:$0xff] %v406_v59 }
  0xf1   :  { %471 = vst [vmem:[%s1033_s3 + $0x1d8] sm:$0xff] %v407_v3  ;;  %472 = vst [vmem:[%s1033_s3 + $0x1e0] sm:$0xff] %v408_v4  ;;  %v219_v7 = vadd.f32 %v513_v2, %v148_v0 }
  0xf2   :  { %473 = vst [vmem:[%s1033_s3 + $0x1e8] sm:$0xff] %v409_v8  ;;  %474 = vst [vmem:[%s1033_s3 + $0x1f0] sm:$0xff] %v410_v1 }
  0xf3   :  { %vm283_vm15 = vcmp.gt.f32.partialorder %v219_v7, 0.0  ;;  %v347_v9 = vmul.f32 0.01, %v219_v7 }
  0xf5   :  { %v411_v10 = vsel %vm283_vm15, %v219_v7, %v347_v9 }
  0xf6   :  { %475 = vst [vmem:[%s1033_s3 + $0x1f8] sm:$0xff] %v411_v10 }

// kernel: conv_bn_act.2
= control target key start
LH: loop header
LB: loop body
LE: loop exit
PB: predicated region body
PF: predicated region fallthrough
CT: control target
= control target key end

     0   :  { %s1235_s21 = smov 0   ;;  %s1237_s22 = smov 0   ;;  %s1528_s0 = inlined_call_operand.vmem [shape: bf16[512,36], index: 0, kind: input, shape index: {}]   ;;  %s1529_s1 = inlined_call_operand.vmem [shape: bf16[36,128], index: 1, kind: input, shape index: {}]   ;;  %s1530_s2 = inlined_call_operand.vmem [shape: f32[1,128], index: 2, kind: input, shape index: {}]   ;;  %s1531_s3 = inlined_call_operand.vmem [shape: f32[1,128], index: 3, kind: input, shape index: {}]   ;;  %s1532_s4 = inlined_call_operand.vmem [shape: f32[512,128], index: 4, kind: output, shape index: {0}]   ;;  %s1533_s5 = inlined_call_operand.vmem [shape: f32[1,128], index: 5, kind: output, shape index: {1}]   ;;  %s1534_s6 = inlined_call_operand.vmem [shape: f32[1,128], index: 6, kind: output, shape index: {2}]  }
   0x1   :  { %s1239_s23 = smov 0  }
   0x2 LB: > { %s26_s24 = sadd.s32 1, %s1193_s22  ;;  %p1018_p0 = scmp.ge.s32.totalorder %s1197_s23, 1  ;;  %s1197_s23 = sphi %s1239_s23, %s17_s23   ;;  %s1193_s22 = sphi %s1237_s22, %s1536_s22   ;;  %s1189_s21 = sphi %s1235_s21, %s1535_s21  }
   0x3   : > { %p27_p1 = scmp.ge.s32.totalorder %s26_s24, 2  ;;  %p257_p2 = scmp.lt.s32.totalorder %s1197_s23, 3 }
   0x5   : > { %s1538_s24 = smov (%p27_p1, %s26_s24), 0  ;;  %p258_p3 = pnand %p1018_p0, %p257_p2 }
   0x6   : > { %v1154_v0 = vld [vmem:[%s1529_s1] sm:$0xff] (!%p258_p3)   ;;  %v1155_v1 = vld [vmem:[%s1529_s1 + $0x8] sm:$0xff] (!%p258_p3)   ;;  %s1019_s29 = sshll.u32 (!%p258_p3), %s1189_s21, 5  ;;  %v1156_v2 = vld [vmem:[%s1529_s1 + $0x10] ss:$0 sps:$4 sm:$0x33] (!%p258_p3)  }
   0x7   : > { %261 = sbr.rel (%p258_p3) target bundleno = 370 (0x172), region = 36  ;;  %1083 = vmatprep.subr.bf16.mxu0 (!%p258_p3), %v1154_v0  ;;  %1121 = vmatprep.subr.bf16.mxu1 (!%p258_p3), %v1154_v0  ;;  %p307_p4 = scmp.lt.s32.totalorder (!%p258_p3), %s1019_s29, 63  ;;  %vm519_vm0 = vcmask (!%p258_p3), 1041408   ;;  %vm470_vm1 = vcmask (!%p258_p3), 293888  }
   0x8   : > { %1084 = vmatpush3.bf16.msra.mxu0 (!%p258_p3), %v1154_v0  ;;  %1124 = vmatpush3.bf16.msra.mxu1 (!%p258_p3), %v1154_v0  ;;  %v521_v3 = vsel (!%p258_p3), %vm519_vm0, %v1156_v2, 0  ;;  %p1058_p5 = scmp.ne.s32.totalorder (!%p258_p3), %s1189_s21, 0 }
   0x9   : > { %1085 = vmatprep.subr.bf16.mxu0 (!%p258_p3), %v1155_v1  ;;  %1122 = vmatprep.subr.bf16.mxu1 (!%p258_p3), %v1155_v1 }
   0xc   : > { %1086 = vmatpush3.bf16.msra.mxu0 (!%p258_p3), %v1155_v1  ;;  %1125 = vmatpush3.bf16.msra.mxu1 (!%p258_p3), %v1155_v1 }
   0xd   : > { %1127 = vmatprep.subr.msk.bf16.mxu0 (!%p258_p3), %vm519_vm0, %v1156_v2  ;;  %1128 = vmatprep.subr.msk.bf16.mxu1 (!%p258_p3), %vm519_vm0, %v1156_v2 }
   0xe   : > { %s1540_s29 = smov (!%p307_p4, %s1019_s29), 63  ;;  %v1199_v52 = vmov (!%p1058_p5), 0.0  }
   0xf   : > { %s1020_s8 = sshll.u32 %s1540_s29, 2  ;;  %s1022_s12 = sshll.u32 %s1540_s29, 3  ;;  %720 = vst [vmem:[%s1533_s5] sm:$0x1] (!%p1058_p5), %v1199_v52  ;;  %721 = vst [vmem:[%s1534_s6] sm:$0x1] (!%p1058_p5), %v1199_v52 }
  0x10   : > { %s1271_s11 = scalar_lea.vmem %s1528_s0, %s1020_s8  ;;  %1088 = vmatpush3.bf16.msra.mxu0 %v521_v3  ;;  %1126 = vmatpush3.bf16.msra.mxu1 %v521_v3  ;;  %s1309_s15 = scalar_lea.vmem %s1532_s4, %s1022_s12 }
  0x11   : > { %v1157_v4 = vld [vmem:[%s1271_s11] sm:$0xff]   ;;  %v1159_v6 = vld [vmem:[%s1271_s11 + $0x8] sm:$0xff]   ;;  %v1161_v8 = vld [vmem:[%s1271_s11 + $0x10] sm:$0xff]  }
  0x12   : > { %v1158_v5 = vld [vmem:[%s1271_s11 + $0x40] sm:$0xff]   ;;  %1089 = vmatprep.mubr.msk.bf16.mxu0 %vm470_vm1, %v1157_v4  ;;  %v1160_v7 = vld [vmem:[%s1271_s11 + $0x48] sm:$0xff]   ;;  %v1162_v9 = vld [vmem:[%s1271_s11 + $0x50] sm:$0xff]  }
  0x13   : > { %1105 = vmatprep.mubr.msk.bf16.mxu1 %vm470_vm1, %v1158_v5  ;;  %1090 = vmatmul.mubr.msk.bf16.vlgmr.msra.gmra.mrb[0].mxu0 %vm470_vm1, %v1159_v6  ;;  %v1163_v10 = vld [vmem:[%s1271_s11 + $0x18] sm:$0xff]   ;;  %v1165_v12 = vld [vmem:[%s1271_s11 + $0x20] sm:$0xff]   ;;  %v1167_v14 = vld [vmem:[%s1271_s11 + $0x28] sm:$0xff]  }
  0x14   : > { %1106 = vmatmul.mubr.msk.bf16.vlgmr.msra.gmra.mrb[0].mxu1 %vm470_vm1, %v1160_v7  ;;  %1093 = vmatprep.mubr.msk.bf16.mxu0 %vm470_vm1, %v1161_v8  ;;  %v1164_v11 = vld [vmem:[%s1271_s11 + $0x58] sm:$0xff]   ;;  %v1166_v13 = vld [vmem:[%s1271_s11 + $0x60] sm:$0xff]   ;;  %v1168_v15 = vld [vmem:[%s1271_s11 + $0x68] sm:$0xff]  }
  0x15   : > { %1109 = vmatprep.mubr.msk.bf16.mxu1 %vm470_vm1, %v1162_v9  ;;  %v1169_v16 = vld [vmem:[%s1271_s11 + $0x30] sm:$0xff]   ;;  %v1171_v18 = vld [vmem:[%s1271_s11 + $0x38] sm:$0xff]  }
  0x16   : > { %v1170_v17 = vld [vmem:[%s1271_s11 + $0x70] sm:$0xff]   ;;  %v1172_v19 = vld [vmem:[%s1271_s11 + $0x78] sm:$0xff]  }
  0x1b   : > { %1094 = vmatmul.mubr.msk.bf16.gmra.mrb[4].mxu0 %vm470_vm1, %v1163_v10 }
  0x1c   : > { %1110 = vmatmul.mubr.msk.bf16.gmra.mrb[4].mxu1 %vm470_vm1, %v1164_v11  ;;  %1097 = vmatprep.mubr.msk.bf16.mxu0 %vm470_vm1, %v1165_v12 }
  0x1d   : > { %1113 = vmatprep.mubr.msk.bf16.mxu1 %vm470_vm1, %v1166_v13 }
  0x23   : > { %1098 = vmatmul.mubr.msk.bf16.gmra.mrb[8].mxu0 %vm470_vm1, %v1167_v14 }
  0x24   : > { %1114 = vmatmul.mubr.msk.bf16.gmra.mrb[8].mxu1 %vm470_vm1, %v1168_v15  ;;  %1101 = vmatprep.mubr.msk.bf16.mxu0 %vm470_vm1, %v1169_v16 }
  0x25   : > { %1117 = vmatprep.mubr.msk.bf16.mxu1 %vm470_vm1, %v1170_v17 }
  0x2b   : > { %1102 = vmatmul.mubr.msk.bf16.gmra.mrb[12].mxu0 %vm470_vm1, %v1171_v18 }
  0x2c   : > { %1118 = vmatmul.mubr.msk.bf16.gmra.mrb[12].mxu1 %vm470_vm1, %v1172_v19 }
  0xe6   : > { %v1311_v20 = vpop.f32.mrb[0].mxu0 }
  0xe7   : > { %v1313_v21 = vpop.f32.mrb[0].mxu1  ;;  %686 = vst [vmem:[%s1309_s15 + $0x10] sm:$0xff] %v1311_v20  ;;  %v1319_v22 = vpop.f32.mrb[1].mxu0 }
  0xe8   : > { %702 = vst [vmem:[%s1309_s15 + $0x90] sm:$0xff] %v1313_v21  ;;  %v1321_v23 = vpop.f32.mrb[1].mxu1  ;;  %684 = vst [vmem:[%s1309_s15] sm:$0xff] %v1319_v22  ;;  %v1327_v24 = vpop.f32.mrb[2].mxu0 }
  0xe9   : > { %700 = vst [vmem:[%s1309_s15 + $0x80] sm:$0xff] %v1321_v23  ;;  %v1329_v25 = vpop.f32.mrb[2].mxu1  ;;  %687 = vst [vmem:[%s1309_s15 + $0x18] sm:$0xff] %v1327_v24  ;;  %v560_v26 = vpop.f32.mrb[3].mxu0 }
  0xea   : > { %703 = vst [vmem:[%s1309_s15 + $0x98] sm:$0xff] %v1329_v25  ;;  %v1335_v27 = vpop.f32.mrb[3].mxu1  ;;  %685 = vst [vmem:[%s1309_s15 + $0x8] sm:$0xff] %v560_v26 }
  0xeb   : > { %701 = vst [vmem:[%s1309_s15 + $0x88] sm:$0xff] %v1335_v27 }
  0xee   : > { %v1340_v28 = vpop.f32.mrb[4].mxu0 }
  0xef   : > { %v1342_v29 = vpop.f32.mrb[4].mxu1  ;;  %690 = vst [vmem:[%s1309_s15 + $0x30] sm:$0xff] %v1340_v28  ;;  %v573_v30 = vpop.f32.mrb[5].mxu0 }
  0xf0   : > { %706 = vst [vmem:[%s1309_s15 + $0xb0] sm:$0xff] %v1342_v29  ;;  %v1348_v31 = vpop.f32.mrb[5].mxu1  ;;  %688 = vst [vmem:[%s1309_s15 + $0x20] sm:$0xff] %v573_v30  ;;  %v1353_v32 = vpop.f32.mrb[6].mxu0 }
  0xf1   : > { %704 = vst [vmem:[%s1309_s15 + $0xa0] sm:$0xff] %v1348_v31  ;;  %v1355_v33 = vpop.f32.mrb[6].mxu1  ;;  %691 = vst [vmem:[%s1309_s15 + $0x38] sm:$0xff] %v1353_v32  ;;  %v576_v34 = vpop.f32.mrb[7].mxu0 }
  0xf2   : > { %707 = vst [vmem:[%s1309_s15 + $0xb8] sm:$0xff] %v1355_v33  ;;  %v1361_v35 = vpop.f32.mrb[7].mxu1  ;;  %689 = vst [vmem:[%s1309_s15 + $0x28] sm:$0xff] %v576_v34 }
  0xf3   : > { %705 = vst [vmem:[%s1309_s15 + $0xa8] sm:$0xff] %v1361_v35 }
  0xf6   : > { %v1366_v36 = vpop.f32.mrb[8].mxu0 }
  0xf7   : > { %v1368_v37 = vpop.f32.mrb[8].mxu1  ;;  %694 = vst [vmem:[%s1309_s15 + $0x50] sm:$0xff] %v1366_v36  ;;  %v589_v38 = vpop.f32.mrb[9].mxu0 }
  0xf8   : > { %710 = vst [vmem:[%s1309_s15 + $0xd0] sm:$0xff] %v1368_v37  ;;  %v1374_v39 = vpop.f32.mrb[9].mxu1  ;;  %692 = vst [vmem:[%s1309_s15 + $0x40] sm:$0xff] %v589_v38  ;;  %v1100_v40 = vpop.f32.mrb[10].mxu0 }
  0xf9   : > { %708 = vst [vmem:[%s1309_s15 + $0xc0] sm:$0xff] %v1374_v39  ;;  %v1379_v41 = vpop.f32.mrb[10].mxu1  ;;  %695 = vst [vmem:[%s1309_s15 + $0x58] sm:$0xff] %v1100_v40  ;;  %v592_v42 = vpop.f32.mrb[11].mxu0 }
  0xfa   : > { %711 = vst [vmem:[%s1309_s15 + $0xd8] sm:$0xff] %v1379_v41  ;;  %v1384_v43 = vpop.f32.mrb[11].mxu1  ;;  %693 = vst [vmem:[%s1309_s15 + $0x48] sm:$0xff] %v592_v42 }
  0xfb   : > { %709 = vst [vmem:[%s1309_s15 + $0xc8] sm:$0xff] %v1384_v43 }
  0xfd   : > { %719 = sbr.rel (%p1058_p5) target bundleno = 260 (0x104), region = 40 }
  0xfe   : > { %v1389_v44 = vpop.f32.mrb[12].mxu0 }
  0xff   : > { %v1391_v45 = vpop.f32.mrb[12].mxu1  ;;  %698 = vst [vmem:[%s1309_s15 + $0x70] sm:$0xff] %v1389_v44  ;;  %v605_v46 = vpop.f32.mrb[13].mxu0 }
 0x100   : > { %714 = vst [vmem:[%s1309_s15 + $0xf0] sm:$0xff] %v1391_v45  ;;  %v1397_v47 = vpop.f32.mrb[13].mxu1  ;;  %696 = vst [vmem:[%s1309_s15 + $0x60] sm:$0xff] %v605_v46  ;;  %v1104_v48 = vpop.f32.mrb[14].mxu0 }
 0x101   : > { %712 = vst [vmem:[%s1309_s15 + $0xe0] sm:$0xff] %v1397_v47  ;;  %v1402_v49 = vpop.f32.mrb[14].mxu1  ;;  %699 = vst [vmem:[%s1309_s15 + $0x78] sm:$0xff] %v1104_v48  ;;  %v608_v50 = vpop.f32.mrb[15].mxu0 }
 0x102   : > { %715 = vst [vmem:[%s1309_s15 + $0xf8] sm:$0xff] %v1402_v49  ;;  %v1407_v51 = vpop.f32.mrb[15].mxu1  ;;  %697 = vst [vmem:[%s1309_s15 + $0x68] sm:$0xff] %v608_v50 }
 0x103   : > { %713 = vst [vmem:[%s1309_s15 + $0xe8] sm:$0xff] %v1407_v51 }
 0x104 PF: > { %v723_v53 = vadd.f32 %v560_v26, %v1319_v22  ;;  %v763_v56 = vmul.f32 %v1319_v22, %v1319_v22  ;;  %v764_v57 = vmul.f32 %v560_v26, %v560_v26  ;;  %v765_v59 = vmul.f32 %v1311_v20, %v1311_v20  ;;  %p1059_p6 = scmp.ne.s32.totalorder %s1189_s21, 1 }
 0x105   : > { %v766_v61 = vmul.f32 %v1327_v24, %v1327_v24  ;;  %v767_v0 = vmul.f32 %v573_v30, %v573_v30  ;;  %v768_v3 = vmul.f32 %v576_v34, %v576_v34  ;;  %v769_v6 = vmul.f32 %v1340_v28, %v1340_v28 }
 0x106   : > { %v724_v54 = vadd.f32 %v1311_v20, %v723_v53  ;;  %v795_v62 = vadd.f32 %v764_v57, %v763_v56  ;;  %v770_v9 = vmul.f32 %v1353_v32, %v1353_v32  ;;  %v771_v12 = vmul.f32 %v589_v38, %v589_v38 }
 0x107   : > { %v772_v15 = vmul.f32 %v592_v42, %v592_v42  ;;  %v773_v18 = vmul.f32 %v1366_v36, %v1366_v36  ;;  %v774_v22 = vmul.f32 %v1100_v40, %v1100_v40  ;;  %v779_v56 = vmul.f32 %v1321_v23, %v1321_v23 }
 0x108   : > { %v725_v55 = vadd.f32 %v1327_v24, %v724_v54  ;;  %v796_v1 = vadd.f32 %v795_v62, %v765_v59 }
 0x10a   : > { %v726_v58 = vadd.f32 %v725_v55, %v573_v30  ;;  %v797_v4 = vadd.f32 %v796_v1, %v766_v61  ;;  %v782_v61 = vmul.f32 %v1329_v25, %v1329_v25  ;;  %v784_v1 = vmul.f32 %v1361_v35, %v1361_v35 }
 0x10c   : > { %v727_v60 = vadd.f32 %v726_v58, %v576_v34  ;;  %v798_v7 = vadd.f32 %v797_v4, %v767_v0  ;;  %v776_v34 = vmul.f32 %v608_v50, %v608_v50 }
 0x10e   : > { %v728_v63 = vadd.f32 %v1340_v28, %v727_v60  ;;  %v799_v10 = vadd.f32 %v798_v7, %v768_v3  ;;  %v775_v28 = vmul.f32 %v605_v46, %v605_v46  ;;  %v785_v3 = vmul.f32 %v1342_v29, %v1342_v29 }
 0x10f   : > { %v787_v7 = vmul.f32 %v1374_v39, %v1374_v39 }
 0x110   : > { %v729_v2 = vadd.f32 %v1353_v32, %v728_v63  ;;  %v800_v13 = vadd.f32 %v799_v10, %v769_v6  ;;  %v783_v63 = vmul.f32 %v1348_v31, %v1348_v31 }
 0x112   : > { %v730_v5 = vadd.f32 %v729_v2, %v589_v38  ;;  %v801_v16 = vadd.f32 %v800_v13, %v770_v9  ;;  %v788_v9 = vmul.f32 %v1384_v43, %v1384_v43  ;;  %v790_v13 = vmul.f32 %v1379_v41, %v1379_v41 }
 0x114   : > { %v731_v8 = vadd.f32 %v730_v5, %v592_v42  ;;  %v802_v19 = vadd.f32 %v801_v16, %v771_v12  ;;  %v777_v42 = vmul.f32 %v1389_v44, %v1389_v44  ;;  %v786_v5 = vmul.f32 %v1355_v33, %v1355_v33 }
 0x116   : > { %v732_v11 = vadd.f32 %v1366_v36, %v731_v8  ;;  %v803_v24 = vadd.f32 %v802_v19, %v772_v15  ;;  %v778_v36 = vmul.f32 %v1104_v48, %v1104_v48  ;;  %v791_v15 = vmul.f32 %v1397_v47, %v1397_v47 }
 0x117   : > { %v793_v19 = vmul.f32 %v1391_v45, %v1391_v45 }
 0x118   : > { %v733_v14 = vadd.f32 %v1100_v40, %v732_v11  ;;  %v804_v30 = vadd.f32 %v803_v24, %v773_v18  ;;  %v789_v11 = vmul.f32 %v1368_v37, %v1368_v37 }
 0x11a   : > { %v734_v17 = vadd.f32 %v733_v14, %v605_v46  ;;  %v805_v52 = vadd.f32 %v804_v30, %v774_v22 }
 0x11c   : > { %v735_v20 = vadd.f32 %v734_v17, %v608_v50  ;;  %v806_v53 = vadd.f32 %v805_v52, %v775_v28  ;;  %v780_v50 = vmul.f32 %v1335_v27, %v1335_v27  ;;  %v792_v17 = vmul.f32 %v1407_v51, %v1407_v51 }
 0x11e   : > { %v736_v26 = vadd.f32 %v1389_v44, %v735_v20  ;;  %v807_v55 = vadd.f32 %v806_v53, %v776_v34  ;;  %v781_v44 = vmul.f32 %v1313_v21, %v1313_v21 }
 0x120   : > { %v737_v32 = vadd.f32 %v1104_v48, %v736_v26  ;;  %v808_v46 = vadd.f32 %v807_v55, %v777_v42 }
 0x122   : > { %v738_v38 = vadd.f32 %v737_v32, %v1321_v23  ;;  %v809_v58 = vadd.f32 %v808_v46, %v778_v36 }
 0x124   : > { %v739_v54 = vadd.f32 %v738_v38, %v1335_v27  ;;  %v810_v60 = vadd.f32 %v809_v58, %v779_v56 }
 0x126   : > { %v740_v40 = vadd.f32 %v1313_v21, %v739_v54  ;;  %v811_v62 = vadd.f32 %v810_v60, %v780_v50  ;;  %v762_v54 = vld [vmem:[%s1534_s6] sm:$0x1] }
 0x128   : > { %v741_v57 = vadd.f32 %v1329_v25, %v740_v40  ;;  %v812_v0 = vadd.f32 %v811_v62, %v781_v44  ;;  %v846_v44 = vld [vmem:[%s1530_s2] sm:$0x1] (!%p1059_p6) }
 0x12a   : > { %v742_v59 = vadd.f32 %v741_v57, %v1348_v31  ;;  %v813_v2 = vadd.f32 %v812_v0, %v782_v61  ;;  %v849_v61 = vld [vmem:[%s1531_s3] sm:$0x1] (!%p1059_p6) }
 0x12c   : > { %v743_v48 = vadd.f32 %v742_v59, %v1361_v35  ;;  %v814_v4 = vadd.f32 %v813_v2, %v783_v63 }
 0x12e   : > { %v744_v23 = vadd.f32 %v1342_v29, %v743_v48  ;;  %v815_v6 = vadd.f32 %v814_v4, %v784_v1 }
 0x130   : > { %v745_v27 = vadd.f32 %v1355_v33, %v744_v23  ;;  %v816_v8 = vadd.f32 %v815_v6, %v785_v3 }
 0x132   : > { %v746_v21 = vadd.f32 %v745_v27, %v1374_v39  ;;  %v817_v10 = vadd.f32 %v816_v8, %v786_v5 }
 0x134   : > { %v747_v25 = vadd.f32 %v746_v21, %v1384_v43  ;;  %v818_v12 = vadd.f32 %v817_v10, %v787_v7 }
 0x136   : > { %v748_v31 = vadd.f32 %v1368_v37, %v747_v25  ;;  %v819_v14 = vadd.f32 %v818_v12, %v788_v9 }
 0x138   : > { %v749_v35 = vadd.f32 %v1379_v41, %v748_v31  ;;  %v820_v16 = vadd.f32 %v819_v14, %v789_v11  ;;  %v794_v41 = vmul.f32 %v1402_v49, %v1402_v49 }
 0x13a   : > { %v750_v29 = vadd.f32 %v749_v35, %v1397_v47  ;;  %v821_v18 = vadd.f32 %v820_v16, %v790_v13 }
 0x13c   : > { %v751_v33 = vadd.f32 %v750_v29, %v1407_v51  ;;  %v822_v20 = vadd.f32 %v821_v18, %v791_v15  ;;  %v722_v51 = vld [vmem:[%s1533_s5] sm:$0x1] }
 0x13e   : > { %v752_v39 = vadd.f32 %v1391_v45, %v751_v33  ;;  %v823_v24 = vadd.f32 %v822_v20, %v792_v17 }
 0x140   : > { %v753_v43 = vadd.f32 %v1402_v49, %v752_v39  ;;  %v824_v28 = vadd.f32 %v823_v24, %v793_v19 }
 0x142   : > { %v754_v37 = vrot.slane %v753_v43, 4  ;;  %v825_v30 = vadd.f32 %v824_v28, %v794_v41 }
 0x144   : > { %v755_v22 = vadd.f32 %v754_v37, %v753_v43  ;;  %v826_v34 = vrot.slane %v825_v30, 4 }
 0x146   : > { %v756_v26 = vrot.slane %v755_v22, 2  ;;  %v827_v38 = vadd.f32 %v826_v34, %v825_v30 }
 0x148   : > { %v757_v47 = vadd.f32 %v756_v26, %v755_v22  ;;  %v828_v45 = vrot.slane %v827_v38, 2 }
 0x14a   : > { %v758_v32 = vrot.slane %v757_v47, 1  ;;  %v829_v49 = vadd.f32 %v828_v45, %v827_v38 }
 0x14c   : > { %v759_v52 = vadd.f32 %v758_v32, %v757_v47  ;;  %v830_v53 = vrot.slane %v829_v49, 1  ;;  %837 = sbr.rel (%p1059_p6) target bundleno = 370 (0x172), region = 44 }
 0x14e   : > { %v760_v42 = vadd.f32 %v759_v52, %v722_v51  ;;  %v831_v36 = vadd.f32 %v830_v53, %v829_v49 }
 0x150   : > { %761 = vst [vmem:[%s1533_s5] sm:$0x1] %v760_v42  ;;  %v832_v55 = vadd.f32 %v831_v36, %v762_v54 }
 0x152   : > { %833 = vst [vmem:[%s1534_s6] sm:$0x1] %v832_v55 }
 0x157   : > { %v838_v40 = vld [vmem:[%s1533_s5] sm:$0x1] }
 0x158   : > { %v839_v46 = vmul.f32 0.001953125, %v838_v40 }
 0x159   : > { %v840_v56 = vld [vmem:[%s1534_s6] sm:$0x1] }
 0x15a   : > { %v841_v57 = vmul.f32 0.001953125, %v840_v56  ;;  %v842_v50 = vmul.f32 %v839_v46, %v839_v46 }
 0x15c   : > { %v843_v58 = vsub.f32 %v841_v57, %v842_v50 }
 0x15e   : > { %v844_v59 = vadd.f32 1e-05, %v843_v58 }
 0x160   : > { %1173 = vrsqrt.f32 %v844_v59 }
 0x16a   : > { %v1174_v60 = vpop.eup %1173 }
 0x16b   : > { %v847_v48 = vmul.f32 %v1174_v60, %v846_v44 }
 0x16d   : > { %848 = vst [vmem:[%s1533_s5] sm:$0x1] %v847_v48  ;;  %v850_v62 = vmul.f32 %v847_v48, %v839_v46 }
 0x16f   : > { %v851_v23 = vsub.f32 %v849_v61, %v850_v62 }
 0x171   : > { %852 = vst [vmem:[%s1534_s6] sm:$0x1] %v851_v23 }
 0x172 PF: > { %s17_s23 = sadd.s32 1, %s1197_s23   ;;  %s1535_s21 = smov %s1193_s22 }
 0x173   : > { %p14_p7 = scmp.ge.s32.totalorder %s17_s23, 4   ;;  %s1536_s22 = smov %s1538_s24 }
 0x175   :  { %16 = sbr.rel (!%p14_p7) target bundleno = 2 (0x2), region = 107 }

</bundles_post_ra>
